<compile_context>
chip_gen: v7x
topology: tpu7x:2x2x1
jax: 0.10.0
libtpu: 0.0.40
codegen_flags: <defaults>
</compile_context>

<pallas_src>
import jax
import jax.numpy as jnp
from jax.experimental import pallas as pl
from jax.experimental.pallas import tpu as pltpu

_LANE = 128
_SUBLANE = 8


def _round_up(x, m):
    return ((x + m - 1) // m) * m


# ---------------------------------------------------------------------------
# Kernels: fused Linear-tanh-Linear-tanh-Linear on one (lane-packed) batch tile.
# TODO(synk): only the 2-hidden-layer tanh configuration of create_mlp is
# implemented; arbitrary depth/activations would need a generated kernel body.
# ---------------------------------------------------------------------------
def _mlp_logits(x_ref, w1_ref, b1_ref, w2_ref, b2_ref, w3_ref, b3_ref):
    cd = w1_ref.dtype                                   # bf16 MXU inputs
    x = x_ref[...].astype(cd)                           # (TB, P*D_in)
    # tanh in f32 (safe on v5e/v6e/v7x); cast to bf16 once so only the narrow
    # copy stays live between layers.
    h1 = jnp.tanh(
        jnp.dot(x, w1_ref[...], preferred_element_type=jnp.float32)
        + b1_ref[...]).astype(cd)                       # (TB, P*H1)
    h2 = jnp.tanh(
        jnp.dot(h1, w2_ref[...], preferred_element_type=jnp.float32)
        + b2_ref[...]).astype(cd)                       # (TB, P*H2)
    return (jnp.dot(h2, w3_ref[...], preferred_element_type=jnp.float32)
            + b3_ref[...])                              # (TB, P), f32


def selector_forward_kernel(x_ref, w1_ref, b1_ref, w2_ref, b2_ref,
                            w3_ref, b3_ref, o_ref):
    o_ref[...] = _mlp_logits(x_ref, w1_ref, b1_ref, w2_ref, b2_ref,
                             w3_ref, b3_ref).astype(o_ref.dtype)


def selector_select_kernel(x_ref, w1_ref, b1_ref, w2_ref, b2_ref,
                           w3_ref, b3_ref, o_ref):
    logits = _mlp_logits(x_ref, w1_ref, b1_ref, w2_ref, b2_ref, w3_ref, b3_ref)
    # sigmoid(x) > 0.5  <=>  x > 0 (exact, incl. boundary). Store the 0/1 mask
    # directly; int32 chosen for guaranteed lowering.
    # TODO(synk): int8 mask output would shave another ~3 B/row of HBM writes.
    o_ref[...] = (logits > 0.0).astype(o_ref.dtype)


# ---------------------------------------------------------------------------
# Lane packing & sizing helpers.
# ---------------------------------------------------------------------------
def _pick_pack(batch, d_in):
    """Largest P with P*D_in <= 128 lanes that divides the batch."""
    p = max(1, min(batch, _LANE // max(d_in, 1)))
    while p > 1 and batch % p:
        p -= 1
    return p


def _pack_weights(params, pack, *, weight_dtype=jnp.bfloat16):
    """Block-diagonal kron(I_P, W) weights / tiled biases (<=130 KiB total)."""
    w1, b1, w2, b2, w3, b3 = params
    if pack == 1:
        return (w1.astype(weight_dtype), b1.astype(jnp.float32),
                w2.astype(weight_dtype), b2.astype(jnp.float32),
                w3.astype(weight_dtype), b3.astype(jnp.float32))
    eye = jnp.eye(pack, dtype=jnp.float32)
    pw = lambda w: jnp.kron(eye, w.astype(jnp.float32)).astype(weight_dtype)
    pb = lambda b: jnp.tile(b.astype(jnp.float32), (1, pack))
    return pw(w1), pb(b1), pw(w2), pb(b2), pw(w3), pb(b3)


def _vmem_capacity_bytes():
    try:
        cap = getattr(pltpu.get_tpu_info(), "vmem_capacity_bytes", None)
        if cap:
            return int(cap)
    except Exception:
        pass
    return 64 * 2**20          # assume the smallest (v7x per-TC) when unknown


def _auto_tile_rows(n_rows, row_bytes, vmem_cap):
    """Packed-row tile: ~2 MiB gp/step on 64 MiB VMEM parts, ~4 MiB on 128 MiB."""
    if n_rows * row_bytes <= 2 * 2**20 or n_rows <= 2 * _SUBLANE:
        return n_rows                                   # single tile
    target = 2 * 2**20 if vmem_cap <= 96 * 2**20 else 4 * 2**20
    tile = max(_SUBLANE, target // row_bytes)
    n_steps = max(2, pl.cdiv(n_rows, tile))
    n_steps += n_steps % 2          # even grid: keep v7x's 2 TensorCores balanced
    tile = _round_up(pl.cdiv(n_rows, n_steps), _SUBLANE)
    return min(tile, n_rows)


# ---------------------------------------------------------------------------
# Shared pallas_call driver.
# ---------------------------------------------------------------------------
def _run_mlp(gp, params, kernel_fn, out_dtype, batch_tile=None):
    w1, _, w2, _, w3, _ = params
    B, D_in = gp.shape
    H1, H2, H3 = w1.shape[1], w2.shape[1], w3.shape[1]
    assert H3 == 1, "Selector requires hidden_sizes[-1] == 1"

    pack = _pick_pack(B, D_in)
    Bp = B // pack
    gp_p = gp.reshape(Bp, pack * D_in)                  # free contiguous view
    pw1, pb1, pw2, pb2, pw3, pb3 = _pack_weights(params, pack)

    vmem_cap = _vmem_capacity_bytes()
    row_bytes = pack * D_in * gp.dtype.itemsize
    if batch_tile is None:
        tbp = _auto_tile_rows(Bp, row_bytes, vmem_cap)
    else:
        # User value is in logical gp rows; convert and round to the sublane
        # multiple so it always lowers.
        tbp = min(Bp, _round_up(max(1, pl.cdiv(int(batch_tile), pack)), _SUBLANE))
    grid = (pl.cdiv(Bp, tbp),)      # ragged last block is masked by Pallas

    full = lambda shape: pl.BlockSpec(shape, lambda i: (0, 0))

    flops = 2 * B * (D_in * H1 + H1 * H2 + H2 * H3)
    transcendentals = B * (H1 + H2)
    bytes_accessed = (int(gp.size) * gp.dtype.itemsize
                      + Bp * pack * jnp.dtype(out_dtype).itemsize
                      + sum(int(a.size) * a.dtype.itemsize
                            for a in (pw1, pb1, pw2, pb2, pw3, pb3)))

    return pl.pallas_call(
        kernel_fn,
        out_shape=jax.ShapeDtypeStruct((Bp, pack), out_dtype),
        grid_spec=pltpu.PrefetchScalarGridSpec(
            num_scalar_prefetch=0,
            grid=grid,
            in_specs=[
                pl.BlockSpec((tbp, pack * D_in), lambda i: (i, 0)),  # gp tile
                full((pack * D_in, pack * H1)),                      # W1 (bf16)
                full((1, pack * H1)),                                # b1 (f32)
                full((pack * H1, pack * H2)),                        # W2 (bf16)
                full((1, pack * H2)),                                # b2 (f32)
                full((pack * H2, pack * H3)),                        # W3 (bf16)
                full((1, pack * H3)),                                # b3 (f32)
            ],
            out_specs=pl.BlockSpec((tbp, pack), lambda i: (i, 0)),
        ),
        compiler_params=pltpu.CompilerParams(
            dimension_semantics=("parallel",),
            vmem_limit_bytes=min(48 * 2**20, (vmem_cap * 3) // 4),
        ),
        cost_estimate=pl.CostEstimate(flops=flops,
                                      transcendentals=transcendentals,
                                      bytes_accessed=bytes_accessed),
    )(gp_p, pw1, pb1, pw2, pb2, pw3, pb3)


# ---------------------------------------------------------------------------
# Public wrappers (mirror Selector.forward / Selector.select).
# ---------------------------------------------------------------------------
def selector_forward(gp, params, *, batch_tile=None):
    """Selector.forward: MLP logits, shape [B, 1], f32."""
    B = gp.shape[0]
    out = _run_mlp(gp, params, selector_forward_kernel, jnp.float32, batch_tile)
    return out.reshape(B, 1)


def selector_select(gp, params, *, batch_tile=None):
    """Selector.select: ravel(sigmoid(forward(gp)) > 0.5), bool [B].

    Threshold is fused into the kernel (no f32 logits ever hit HBM).
    """
    B = gp.shape[0]
    mask = _run_mlp(gp, params, selector_select_kernel, jnp.int32, batch_tile)
    return mask.reshape(B) != 0


# ---------------------------------------------------------------------------
# Parameter init (PyTorch nn.Linear-style uniform bounds), f32 like the module.
# Note: the kernel quantizes W and activations to bf16 internally, so logits
# can differ from an exact f32 reference by ~1e-2 near zero.
# ---------------------------------------------------------------------------
def init_params(key, input_size, hidden_sizes):
    assert hidden_sizes[-1] == 1
    sizes = [input_size] + list(hidden_sizes)
    params = []
    for idx in range(len(hidden_sizes)):
        fan_in, fan_out = sizes[idx], sizes[idx + 1]
        key, kw, kb = jax.random.split(key, 3)
        bound = 1.0 / (fan_in ** 0.5)
        w = jax.random.uniform(kw, (fan_in, fan_out), jnp.float32, -bound, bound)
        b = jax.random.uniform(kb, (1, fan_out), jnp.float32, -bound, bound)
        params.extend([w, b])
    return tuple(params)


def reference_forward(gp, params):
    """Pure-JAX reference mirroring the kernel's bf16-input / f32-accum path."""
    w1, b1, w2, b2, w3, b3 = params
    f32, bf16 = jnp.float32, jnp.bfloat16
    q = lambda a: a.astype(bf16).astype(f32)
    x = q(gp)
    h1 = q(jnp.tanh(x @ q(w1) + b1))
    h2 = q(jnp.tanh(h1 @ q(w2) + b2))
    return h2 @ q(w3) + b3


if __name__ == "__main__":
    D_in = 32
    hidden_sizes = (64, 32, 1)

    key = jax.random.PRNGKey(0)
    kp, k1, k2, k3 = jax.random.split(key, 4)
    params = init_params(kp, D_in, hidden_sizes)

    # Case 1: small batch, lane-packed (pack=4), single tile.
    B1 = 16
    gp1 = jax.random.normal(k1, (B1, D_in), jnp.float32)
    out1 = jax.block_until_ready(selector_forward(gp1, params))
    ref1 = reference_forward(gp1, params)
    assert out1.shape == (B1, 1)
    assert jnp.allclose(out1, ref1, atol=2e-2, rtol=2e-2)

    # Case 2: explicit batch_tile -> multi-step grid / pipelined path.
    B2 = 64
    gp2 = jax.random.normal(k2, (B2, D_in), jnp.float32)
    out2 = jax.block_until_ready(selector_forward(gp2, params, batch_tile=32))
    ref2 = reference_forward(gp2, params)
    assert out2.shape == (B2, 1)
    assert jnp.allclose(out2, ref2, atol=2e-2, rtol=2e-2)

    # Case 3: batch not divisible by 4 -> reduced packing fallback.
    B3 = 10
    gp3 = jax.random.normal(k3, (B3, D_in), jnp.float32)
    out3 = jax.block_until_ready(selector_forward(gp3, params))
    ref3 = reference_forward(gp3, params)
    assert out3.shape == (B3, 1)
    assert jnp.allclose(out3, ref3, atol=2e-2, rtol=2e-2)

    # Case 4: fused select path (threshold computed inside the kernel),
    # checked away from the decision boundary (bf16 quantization margin).
    sel = jax.block_until_ready(selector_select(gp1, params))
    assert sel.shape == (B1,) and sel.dtype == jnp.bool_
    clear_margin = jnp.abs(ref1[:, 0]) > 1e-3
    assert bool(jnp.all((sel == (ref1[:, 0] > 0.0)) | ~clear_margin))

    print("KERNEL_OK")
</pallas_src>

<mosaic_0001>
module attributes {stable_mosaic.version = 11 : i64} {
  func.func @selector_forward_kernel(%arg0: i32, %arg1: memref<4x128xf32, #tpu.memory_space<vmem>>, %arg2: memref<128x256xbf16, #tpu.memory_space<vmem>>, %arg3: memref<1x256xf32, #tpu.memory_space<vmem>>, %arg4: memref<256x128xbf16, #tpu.memory_space<vmem>>, %arg5: memref<1x128xf32, #tpu.memory_space<vmem>>, %arg6: memref<128x4xbf16, #tpu.memory_space<vmem>>, %arg7: memref<1x4xf32, #tpu.memory_space<vmem>>, %arg8: memref<4x4xf32, #tpu.memory_space<vmem>>) attributes {dimension_semantics = [#tpu.dimension_semantics<parallel>], iteration_bounds = array<i64: 1>, scalar_prefetch = 0 : i64, scratch_operands = 0 : i64, tpu.core_type = #tpu.core_type<tc>, window_params = [{transform_indices = @transform_0, window_bounds = array<i64: 4, 128>}, {pipeline_mode = #tpu.pipeline_mode<synchronous>, transform_indices = @transform_1, window_bounds = array<i64: 128, 256>}, {pipeline_mode = #tpu.pipeline_mode<synchronous>, transform_indices = @transform_2, window_bounds = array<i64: 1, 256>}, {pipeline_mode = #tpu.pipeline_mode<synchronous>, transform_indices = @transform_3, window_bounds = array<i64: 256, 128>}, {pipeline_mode = #tpu.pipeline_mode<synchronous>, transform_indices = @transform_4, window_bounds = array<i64: 1, 128>}, {pipeline_mode = #tpu.pipeline_mode<synchronous>, transform_indices = @transform_5, window_bounds = array<i64: 128, 4>}, {pipeline_mode = #tpu.pipeline_mode<synchronous>, transform_indices = @transform_6, window_bounds = array<i64: 1, 4>}, {transform_indices = @transform_7, window_bounds = array<i64: 4, 4>}]} {
    %c0 = arith.constant 0 : index
    %c0_0 = arith.constant 0 : index
    %0 = vector.load %arg1[%c0, %c0_0] : memref<4x128xf32, #tpu.memory_space<vmem>>, vector<4x128xf32>
    %1 = arith.truncf %0 : vector<4x128xf32> to vector<4x128xbf16>
    %c0_1 = arith.constant 0 : index
    %c0_2 = arith.constant 0 : index
    %2 = vector.load %arg2[%c0_1, %c0_2] : memref<128x256xbf16, #tpu.memory_space<vmem>>, vector<128x256xbf16>
    %cst = arith.constant dense<0.000000e+00> : vector<4x256xf32>
    %3 = tpu.matmul %1, %2, %cst {dimension_numbers = #tpu.dot_dimension_numbers<[1], [0], [0], [1], [0, 0, 1, 1], [], []>} : vector<4x128xbf16>, vector<128x256xbf16>, vector<4x256xf32> -> vector<4x256xf32>
    %c0_3 = arith.constant 0 : index
    %c0_4 = arith.constant 0 : index
    %4 = vector.load %arg3[%c0_3, %c0_4] : memref<1x256xf32, #tpu.memory_space<vmem>>, vector<1x256xf32>
    %5 = vector.broadcast %4 : vector<1x256xf32> to vector<4x256xf32>
    %6 = arith.addf %3, %5 : vector<4x256xf32>
    %7 = math.tanh %6 : vector<4x256xf32>
    %8 = arith.truncf %7 : vector<4x256xf32> to vector<4x256xbf16>
    %c0_5 = arith.constant 0 : index
    %c0_6 = arith.constant 0 : index
    %9 = vector.load %arg4[%c0_5, %c0_6] : memref<256x128xbf16, #tpu.memory_space<vmem>>, vector<256x128xbf16>
    %cst_7 = arith.constant dense<0.000000e+00> : vector<4x128xf32>
    %10 = tpu.matmul %8, %9, %cst_7 {dimension_numbers = #tpu.dot_dimension_numbers<[1], [0], [0], [1], [0, 0, 1, 1], [], []>} : vector<4x256xbf16>, vector<256x128xbf16>, vector<4x128xf32> -> vector<4x128xf32>
    %c0_8 = arith.constant 0 : index
    %c0_9 = arith.constant 0 : index
    %11 = vector.load %arg5[%c0_8, %c0_9] : memref<1x128xf32, #tpu.memory_space<vmem>>, vector<1x128xf32>
    %12 = vector.broadcast %11 : vector<1x128xf32> to vector<4x128xf32>
    %13 = arith.addf %10, %12 : vector<4x128xf32>
    %14 = math.tanh %13 : vector<4x128xf32>
    %15 = arith.truncf %14 : vector<4x128xf32> to vector<4x128xbf16>
    %c0_10 = arith.constant 0 : index
    %c0_11 = arith.constant 0 : index
    %16 = vector.load %arg6[%c0_10, %c0_11] : memref<128x4xbf16, #tpu.memory_space<vmem>>, vector<128x4xbf16>
    %cst_12 = arith.constant dense<0.000000e+00> : vector<4x4xf32>
    %17 = tpu.matmul %15, %16, %cst_12 {dimension_numbers = #tpu.dot_dimension_numbers<[1], [0], [0], [1], [0, 0, 1, 1], [], []>} : vector<4x128xbf16>, vector<128x4xbf16>, vector<4x4xf32> -> vector<4x4xf32>
    %c0_13 = arith.constant 0 : index
    %c0_14 = arith.constant 0 : index
    %18 = vector.load %arg7[%c0_13, %c0_14] : memref<1x4xf32, #tpu.memory_space<vmem>>, vector<1x4xf32>
    %19 = vector.broadcast %18 : vector<1x4xf32> to vector<4x4xf32>
    %20 = arith.addf %17, %19 : vector<4x4xf32>
    %c0_15 = arith.constant 0 : index
    %c0_16 = arith.constant 0 : index
    %21 = vector.load %arg8[%c0_15, %c0_16] : memref<4x4xf32, #tpu.memory_space<vmem>>, vector<4x4xf32>
    tpu.vector_store %arg8[%c0_15, %c0_16], %20 {strides = array<i32>} : memref<4x4xf32, #tpu.memory_space<vmem>>, vector<4x4xf32>,
    return
  }
  func.func @transform_0(%arg0: i32) -> (i32, i32) {
    %c0_i32 = arith.constant 0 : i32
    %c0_i32_0 = arith.constant 0 : i32
    return %arg0, %c0_i32 : i32, i32
  }
  func.func @transform_1(%arg0: i32) -> (i32, i32) {
    %c0_i32 = arith.constant 0 : i32
    %c0_i32_0 = arith.constant 0 : i32
    %c0_i32_1 = arith.constant 0 : i32
    return %c0_i32, %c0_i32_0 : i32, i32
  }
  func.func @transform_2(%arg0: i32) -> (i32, i32) {
    %c0_i32 = arith.constant 0 : i32
    %c0_i32_0 = arith.constant 0 : i32
    %c0_i32_1 = arith.constant 0 : i32
    return %c0_i32, %c0_i32_0 : i32, i32
  }
  func.func @transform_3(%arg0: i32) -> (i32, i32) {
    %c0_i32 = arith.constant 0 : i32
    %c0_i32_0 = arith.constant 0 : i32
    %c0_i32_1 = arith.constant 0 : i32
    return %c0_i32, %c0_i32_0 : i32, i32
  }
  func.func @transform_4(%arg0: i32) -> (i32, i32) {
    %c0_i32 = arith.constant 0 : i32
    %c0_i32_0 = arith.constant 0 : i32
    %c0_i32_1 = arith.constant 0 : i32
    return %c0_i32, %c0_i32_0 : i32, i32
  }
  func.func @transform_5(%arg0: i32) -> (i32, i32) {
    %c0_i32 = arith.constant 0 : i32
    %c0_i32_0 = arith.constant 0 : i32
    %c0_i32_1 = arith.constant 0 : i32
    return %c0_i32, %c0_i32_0 : i32, i32
  }
  func.func @transform_6(%arg0: i32) -> (i32, i32) {
    %c0_i32 = arith.constant 0 : i32
    %c0_i32_0 = arith.constant 0 : i32
    %c0_i32_1 = arith.constant 0 : i32
    return %c0_i32, %c0_i32_0 : i32, i32
  }
  func.func @transform_7(%arg0: i32) -> (i32, i32) {
    %c0_i32 = arith.constant 0 : i32
    %c0_i32_0 = arith.constant 0 : i32
    return %arg0, %c0_i32 : i32, i32
  }
}

</mosaic_0001>

<bundles_post_ra>
// kernel: tpu_custom_call.1
= control target key start
LH: loop header
LB: loop body
LE: loop exit
PB: predicated region body
PF: predicated region fallthrough
CT: control target
= control target key end

     0   :  { %12 = vsyncpa [#allocation3], 0  ;;  %s868_s0 = inlined_call_operand.vmem [shape: f32[4,128], index: 0, kind: input, shape index: {}]   ;;  %s869_s1 = inlined_call_operand.hbm [shape: bf16[128,256], index: 1, kind: input, shape index: {}]   ;;  %s870_s2 = inlined_call_operand.vmem [shape: f32[1,256], index: 2, kind: input, shape index: {}]   ;;  %s871_s3 = inlined_call_operand.hbm [shape: bf16[256,128], index: 3, kind: input, shape index: {}]   ;;  %s872_s4 = inlined_call_operand.vmem [shape: f32[1,128], index: 4, kind: input, shape index: {}]   ;;  %s873_s5 = inlined_call_operand.vmem [shape: bf16[128,4], index: 5, kind: input, shape index: {}]   ;;  %s874_s6 = inlined_call_operand.vmem [shape: f32[1,4], index: 6, kind: input, shape index: {}]   ;;  %s875_s7 = inlined_call_operand.hbm [shape: f32[4,4], index: 7, kind: output, shape index: {}]  }
   0x1   :  { %13 = vsyncpa [#allocation6], 0 }
   0x2   :  { %14 = vsyncpa [#allocation4], 0  ;;  %s746_s24 = smov [#allocation2]   ;;  %s674_s28 = scalar_lea.hbm %s869_s1, 2048 }
   0x3   :  { %s22_s25 = sshll.u32 %s746_s24, 4  ;;  %p675_p0 = scmp.ne.s32.totalorder %s869_s1, %s674_s28  ;;  %s23_s25 = int_to_ptr.vmem [resolvable:$true] %s22_s25 }
   0x4   :  { %p678_p1 = scmp.lt.u32.totalorder %s674_s28, %s869_s1 }
   0x6   :  { %p680_p2 = pnand %p678_p1, %p675_p0 }
   0x8   :  { %683 = shalt.err (!%p680_p2)
}
   0x9   :  { %s684_s10 = scalar_lea.vmem %s23_s25, 2048  ;;  %p689_p4 = scmp.lt.s32.totalorder %s23_s25, %s23_s25 }
   0xa   :  { %p685_p3 = scmp.ne.s32.totalorder %s23_s25, %s684_s10  ;;  %p690_p5 = scmp.lt.s32.totalorder %s684_s10, %s684_s10 }
   0xc   :  { %p691_p6 = por %p690_p5, %p689_p4 }
   0xe   :  { %p692_p7 = pnand %p691_p6, %p685_p3 }
  0x10   :  { %695 = shalt.err (!%p692_p7)
}
  0x11   :  { %s747_s11 = smov 128   ;;  %s748_s12 = smov 8  }
  0x12   :  { %28 = dma.hbm_to_vmem [thread:$0]  %s869_s1, 2048, %s23_s25, [#allocation3], %s747_s11, %s747_s11, %s748_s12  }
  0x13   :  { %s749_s15 = smov [#allocation5]   ;;  %s696_s19 = scalar_lea.hbm %s871_s3, 2048 }
  0x14   :  { %s36_s16 = sshll.u32 %s749_s15, 4  ;;  %p697_p8 = scmp.ne.s32.totalorder %s871_s3, %s696_s19  ;;  %s37_s16 = int_to_ptr.vmem [resolvable:$true] %s36_s16 }
  0x15   :  { %p700_p9 = scmp.lt.u32.totalorder %s696_s19, %s871_s3 }
  0x17   :  { %p702_p10 = pnand %p700_p9, %p697_p8 }
  0x19   :  { %705 = shalt.err (!%p702_p10)
}
  0x1a   :  { %s706_s24 = scalar_lea.vmem %s37_s16, 2048  ;;  %p711_p12 = scmp.lt.s32.totalorder %s37_s16, %s37_s16 }
  0x1b   :  { %p707_p11 = scmp.ne.s32.totalorder %s37_s16, %s706_s24  ;;  %p712_p13 = scmp.lt.s32.totalorder %s706_s24, %s706_s24 }
  0x1d   :  { %p713_p0 = por %p712_p13, %p711_p12 }
  0x1f   :  { %p714_p1 = pnand %p713_p0, %p707_p11 }
  0x21   :  { %717 = shalt.err (!%p714_p1)
}
  0x22   :  { %s750_s1 = smov 64   ;;  %s751_s25 = smov 4  }
  0x23   :  { %42 = dma.hbm_to_vmem [thread:$0]  %s871_s3, 2048, %s37_s16, [#allocation6], %s750_s1, %s750_s1, %s751_s25  }
  0x24   :  { %740 = dma.done.wait [#allocation3], 2048  }
  0x25   :  { %741 = vsyncadd [#allocation3], 4294965248 }
  0x26   :  { %742 = dma.done.wait [#allocation6], 2048  }
  0x27   :  { %743 = vsyncadd [#allocation6], 4294965248  ;;  %v752_v0 = vmov 0   ;;  %v620_v1 = vld [vmem:[#allocation2 + $0x4] ss:$8 sps:$4 sm:$0xff]   ;;  %v648_v15 = vld [vmem:[#allocation5 + $0x50] sm:$0xff]   ;;  %v76_v39 = vlaneseq }
  0x28   :  { %198 = vmatprep.mubr.bf16.mxu0 %v752_v0  ;;  %v622_v2 = vld [vmem:[#allocation2] ss:$8 sps:$4 sm:$0xff]   ;;  %166 = vmatprep.subr.bf16.mxu0 %v620_v1  ;;  %v623_v3 = vld [vmem:[#allocation2 + $0x14] ss:$8 sps:$4 sm:$0xff]   ;;  %v625_v4 = vld [vmem:[#allocation2 + $0x10] ss:$8 sps:$4 sm:$0xff]  }
  0x29   :  { %167 = vmatpush1.bf16.msra.mxu0 %v622_v2  ;;  %v626_v5 = vld [vmem:[#allocation2 + $0x24] ss:$8 sps:$4 sm:$0xff]   ;;  %v628_v6 = vld [vmem:[#allocation2 + $0x20] ss:$8 sps:$4 sm:$0xff]   ;;  %v629_v7 = vld [vmem:[#allocation2 + $0x34] ss:$8 sps:$4 sm:$0xff]  }
  0x2a   :  { %168 = vmatprep.subr.bf16.mxu0 %v623_v3  ;;  %v631_v8 = vld [vmem:[#allocation2 + $0x30] ss:$8 sps:$4 sm:$0xff]   ;;  %v632_v9 = vld [vmem:[#allocation2 + $0x44] ss:$8 sps:$4 sm:$0xff]   ;;  %v634_v12 = vld [vmem:[#allocation2 + $0x40] ss:$8 sps:$4 sm:$0xff]  }
  0x2b   :  { %v644_v10 = vld [vmem:[#allocation5 + $0x40] sm:$0xff]   ;;  %v646_v13 = vld [vmem:[#allocation5 + $0x48] sm:$0xff]   ;;  %v635_v16 = vld [vmem:[#allocation2 + $0x54] ss:$8 sps:$4 sm:$0xff]   ;;  %v753_v36 = vmov 0.0   ;;  %v77_v40 = vshrl.u32 %v76_v39, 7 }
  0x2c   :  { %v645_v11 = vld [vmem:[#allocation5] sm:$0xff]   ;;  %559 = vmatprep.subr.bf16.mxu1 %v644_v10  ;;  %v647_v14 = vld [vmem:[#allocation5 + $0x8] sm:$0xff]   ;;  %v637_v17 = vld [vmem:[#allocation2 + $0x50] ss:$8 sps:$4 sm:$0xff]   ;;  %vm754_vm0 = vmmov 0   ;;  %vm499_vm1 = vcmask 27648  }
  0x2d   :  { %169 = vmatpush1.bf16.msra.mxu0 %v625_v4  ;;  %560 = vmatpush3.bf16.msra.mxu1 %v645_v11  ;;  %v638_v18 = vld [vmem:[#allocation2 + $0x64] ss:$8 sps:$4 sm:$0xff]   ;;  %v649_v19 = vld [vmem:[#allocation5 + $0x10] sm:$0xff]   ;;  %v650_v20 = vld [vmem:[#allocation5 + $0x58] sm:$0xff]   ;;  %v78_v41 = vsub.s32 0, %v77_v40  ;;  %v82_v43 = vsub.s32 1, %v77_v40 }
  0x2e   :  { %170 = vmatprep.subr.bf16.mxu0 %v626_v5  ;;  %561 = vmatprep.subr.bf16.mxu1 %v646_v13  ;;  %v651_v21 = vld [vmem:[#allocation5 + $0x18] sm:$0xff]   ;;  %v640_v22 = vld [vmem:[#allocation2 + $0x60] ss:$8 sps:$4 sm:$0xff]   ;;  %v656_v31 = vld [vmem:[#allocation5 + $0x70] sm:$0xff]  }
  0x2f   :  { %v641_v23 = vld [vmem:[#allocation2 + $0x74] ss:$8 sps:$4 sm:$0xff]   ;;  %v643_v24 = vld [vmem:[#allocation2 + $0x70] ss:$8 sps:$4 sm:$0xff]   ;;  %v56_v25 = vld [vmem:[%s868_s0] sm:$0xf] }
  0x30   :  { %v57_v26 = vpack.c.bf16 %v56_v25, %v56_v25  ;;  %v652_v27 = vld [vmem:[#allocation5 + $0x60] sm:$0xff]   ;;  %v654_v29 = vld [vmem:[#allocation5 + $0x68] sm:$0xff]   ;;  %v657_v32 = vld [vmem:[#allocation5 + $0x30] sm:$0xff]  }
  0x31   :  { %171 = vmatpush1.bf16.msra.mxu0 %v628_v6  ;;  %562 = vmatpush3.bf16.msra.mxu1 %v647_v14  ;;  %v653_v28 = vld [vmem:[#allocation5 + $0x20] sm:$0xff]   ;;  %v655_v30 = vld [vmem:[#allocation5 + $0x28] sm:$0xff]   ;;  %v658_v33 = vld [vmem:[#allocation5 + $0x78] sm:$0xff]  }
  0x32   :  { %172 = vmatprep.subr.bf16.mxu0 %v629_v7  ;;  %563 = vmatprep.subr.bf16.mxu1 %v648_v15  ;;  %v659_v34 = vld [vmem:[#allocation5 + $0x38] sm:$0xff]   ;;  %v660_v35 = vld [vmem:[%s873_s5] sm:$0xff]   ;;  %v661_v37 = vld [vmem:[%s873_s5 + $0x8] sm:$0xff]  }
  0x33   :  { %v662_v38 = vld [vmem:[%s873_s5 + $0x10] sm:$0xff]   ;;  %v74_v42 = vld [vmem:[%s870_s2] sm:$0x3]  ;;  %v663_v56 = vld [vmem:[%s873_s5 + $0x18] sm:$0xff]  }
  0x34   :  { %v79_v44 = vrot.slane %v74_v42, %v78_v41  ;;  %v83_v45 = vrot.slane %v74_v42, %v82_v43  ;;  %v664_v57 = vld [vmem:[%s873_s5 + $0x20] sm:$0xff]   ;;  %v665_v58 = vld [vmem:[%s873_s5 + $0x28] sm:$0xff]   ;;  %v666_v59 = vld [vmem:[%s873_s5 + $0x30] sm:$0xff]  }
  0x35   :  { %173 = vmatpush1.bf16.msra.mxu0 %v631_v8  ;;  %564 = vmatpush3.bf16.msra.mxu1 %v649_v19  ;;  %v667_v60 = vld [vmem:[%s873_s5 + $0x38] sm:$0xff]   ;;  %v533_v62 = vld [vmem:[%s872_s4] ss:$0 sm:$0xff]  ;;  %s755_s5 = smov [#allocation7]  }
  0x36   :  { %174 = vmatprep.subr.bf16.mxu0 %v632_v9  ;;  %565 = vmatprep.subr.bf16.mxu1 %v650_v20  ;;  %v550_v6 = vld [vmem:[%s874_s6] ss:$0 sm:$0xff]  ;;  %s507_s25 = sshll.u32 %s755_s5, 4  ;;  %s508_s25 = int_to_ptr.vmem [resolvable:$true] %s507_s25 }
  0x37   :  { %s718_s4 = scalar_lea.vmem %s508_s25, 64  ;;  %p723_p3 = scmp.lt.s32.totalorder %s508_s25, %s508_s25 }
  0x38   :  { %p719_p2 = scmp.ne.s32.totalorder %s508_s25, %s718_s4  ;;  %p724_p4 = scmp.lt.s32.totalorder %s718_s4, %s718_s4 }
  0x39   :  { %175 = vmatpush1.bf16.msra.mxu0 %v634_v12  ;;  %566 = vmatpush3.bf16.msra.mxu1 %v651_v21 }
  0x3a   :  { %176 = vmatprep.subr.bf16.mxu0 %v635_v16  ;;  %567 = vmatprep.subr.bf16.mxu1 %v652_v27  ;;  %p725_p5 = por %p724_p4, %p723_p3 }
  0x3c   :  { %p726_p6 = pnand %p725_p5, %p719_p2 }
  0x3d   :  { %177 = vmatpush1.bf16.msra.mxu0 %v637_v17  ;;  %568 = vmatpush3.bf16.msra.mxu1 %v653_v28 }
  0x3e   :  { %178 = vmatprep.subr.bf16.mxu0 %v638_v18  ;;  %569 = vmatprep.subr.bf16.mxu1 %v654_v29 }
  0x41   :  { %179 = vmatpush1.bf16.msra.mxu0 %v640_v22  ;;  %570 = vmatpush3.bf16.msra.mxu1 %v655_v30 }
  0x42   :  { %180 = vmatprep.subr.bf16.mxu0 %v641_v23  ;;  %571 = vmatprep.subr.bf16.mxu1 %v656_v31 }
  0x45   :  { %181 = vmatpush1.bf16.msra.mxu0 %v643_v24  ;;  %572 = vmatpush3.bf16.msra.mxu1 %v657_v32 }
  0x46   :  { %573 = vmatprep.subr.bf16.mxu1 %v658_v33  ;;  %590 = vmatprep.subr.bf16.mxu0 %v753_v36 }
  0x48   :  { %199 = vmatmul.mubr.bf16.vlgmr.msra.gmra.mrb[0].mxu0 %v57_v26 }
  0x49   :  { %574 = vmatpush3.bf16.msra.mxu1 %v659_v34  ;;  %591 = vmatpush3.bf16.msra.mxu0 %v660_v35 }
  0x4a   :  { %592 = vmatprep.subr.bf16.mxu0 %v753_v36  ;;  %606 = vmatprep.mubr.msk.bf16.mxu0 %vm754_vm0, %v753_v36 }
  0x4d   :  { %593 = vmatpush3.bf16.msra.mxu0 %v661_v37 }
  0x4e   :  { %594 = vmatprep.subr.bf16.mxu0 %v753_v36 }
  0x51   :  { %595 = vmatpush3.bf16.msra.mxu0 %v662_v38 }
  0x52   :  { %596 = vmatprep.subr.bf16.mxu0 %v753_v36 }
  0x55   :  { %597 = vmatpush3.bf16.msra.mxu0 %v663_v56 }
  0x56   :  { %598 = vmatprep.subr.bf16.mxu0 %v753_v36 }
  0x59   :  { %599 = vmatpush3.bf16.msra.mxu0 %v664_v57 }
  0x5a   :  { %600 = vmatprep.subr.bf16.mxu0 %v753_v36 }
  0x5d   :  { %601 = vmatpush3.bf16.msra.mxu0 %v665_v58 }
  0x5e   :  { %602 = vmatprep.subr.bf16.mxu0 %v753_v36 }
  0x61   :  { %603 = vmatpush3.bf16.msra.mxu0 %v666_v59 }
  0x62   :  { %604 = vmatprep.subr.bf16.mxu0 %v753_v36 }
  0x65   :  { %605 = vmatpush3.bf16.msra.mxu0 %v667_v60 }
 0x11b   :  { %v200_v46 = vpop.f32.mrb[0].mxu0 }
 0x11c   :  { %v201_v47 = vadd.f32 %v200_v46, %v79_v44  ;;  %v202_v48 = vpop.f32.mrb[1].mxu0 }
 0x11d   :  { %v203_v49 = vadd.f32 %v202_v48, %v83_v45  ;;  %v204_v50 = vpop.f32.mrb[2].mxu0 }
 0x11e   :  { %668 = vtanh.f32 %v201_v47  ;;  %v205_v51 = vpop.f32.mrb[3].mxu0 }
 0x11f   :  { %670 = vtanh.f32 %v203_v49 }
 0x128   :  { %v669_v52 = vpop.eup %668 }
 0x129   :  { %v671_v53 = vpop.eup %670  ;;  %v209_v55 = vpack.c.bf16 %v669_v52, %v669_v52 }
 0x12a   :  { %v210_v54 = vpack.c.bf16 %v671_v53, %v671_v53 }
 0x12c   :  { %378 = vmatprep.mubr.bf16.mxu1 %v210_v54 }
 0x12d   :  { %379 = vmatmul.mubr.bf16.vlgmr.msra.gmra.mrb[0].mxu1 %v209_v55 }
 0x200   :  { %v575_v61 = vpop.f32.mrb[0].mxu1 }
 0x201   :  { %v576_v63 = vpop.f32.mrb[1].mxu1 }
 0x202   :  { %v577_v0 = vadd.f32 %v576_v63, %v575_v61  ;;  %v578_v1 = vpop.f32.mrb[2].mxu1 }
 0x203   :  { %v579_v2 = vpop.f32.mrb[3].mxu1 }
 0x204   :  { %v381_v3 = vadd.f32 %v577_v0, %v533_v62 }
 0x206   :  { %672 = vtanh.f32 %v381_v3 }
 0x210   :  { %v673_v4 = vpop.eup %672 }
 0x211   :  { %v387_v5 = vpack.c.bf16 %v673_v4, %v673_v4 }
 0x213   :  { %607 = vmatmul.mubr.bf16.vlgmr.msra.gmra.mrb[4].mxu0 %v387_v5 }
 0x2e6   :  { %v493_v7 = vpop.f32.mrb[4].mxu0 }
 0x2e7   :  { %v494_v8 = vadd.f32 %v550_v6, %v493_v7  ;;  %v608_v9 = vpop.f32.mrb[5].mxu0 }
 0x2e8   :  { %v496_v10 = vpop.f32.mrb[6].mxu0 }
 0x2e9   :  { %v609_v11 = vpop.f32.mrb[7].mxu0  ;;  %500 = vst.msk [vmem:[#allocation7] sm:$0xf] %vm499_vm1, %v494_v8 }
 0x2ea   :  { %729 = shalt.err (!%p726_p6)
}
 0x2eb   :  { %s730_s6 = scalar_lea.hbm %s875_s7, 64 }
 0x2ec   :  { %p731_p7 = scmp.ne.s32.totalorder %s875_s7, %s730_s6  ;;  %p734_p8 = scmp.lt.u32.totalorder %s730_s6, %s875_s7 }
 0x2ee   :  { %p736_p9 = pnand %p734_p8, %p731_p7 }
 0x2f0   :  { %739 = shalt.err (!%p736_p9)
}
 0x2f1   :  { %510 = dma.vmem_to_hbm [thread:$0]  %s508_s25, 64, %s875_s7, [#allocation4]  }
 0x2f2   :  { %744 = dma.done.wait [#allocation4], 64  }
 0x2f3   :  { %745 = vsyncadd [#allocation4], 4294967232 }
 0x2f4   :  { %514 = vsyncpa [#allocation3], 1 }
 0x2f5   :  { %515 = vsyncpa [#allocation6], 1 }
 0x2f6   :  { %516 = vsyncpa [#allocation4], 1 }

</bundles_post_ra>
